<compile_context>
chip_gen: v7x
topology: tpu7x:2x2x1
jax: 0.10.0
libtpu: 0.0.40
codegen_flags: <defaults>
</compile_context>

<pallas_src>
import functools
import math

import numpy as np
import jax
import jax.numpy as jnp
from jax.experimental import pallas as pl
from jax.experimental.pallas import tpu as pltpu


def _pick_tile(dim, want):
    """Largest tile <= want that divides dim and is sublane-friendly."""
    if dim <= want:
        return dim
    for t in range(want, 0, -1):
        if dim % t == 0 and (t % 8 == 0 or t == dim):
            return t
    return dim


# ---------------------------------------------------------------------------
# Kernel A: fused per-head QKV projection + RoPE (+ attention scale on q).
# ---------------------------------------------------------------------------
def _qkv_rope_kernel(x_ref, wqkv_ref, cos_ref, sinf_ref,
                     q_ref, k_ref, v_ref, *, head_dim, scale):
    hd = head_dim
    x = x_ref[0]                                   # (tq, H)    bf16
    w = wqkv_ref[0]                                # (H, 3*hd)  bf16

    qkv = jnp.dot(x, w, preferred_element_type=jnp.float32)   # (tq, 3*hd) f32
    q = qkv[:, :hd]
    k = qkv[:, hd:2 * hd]
    v = qkv[:, 2 * hd:]

    cos = cos_ref[...]                             # (tq, hd) f32
    sinf = sinf_ref[...]                           # sign-folded sin

    # rotate_half(t) == roll(t, hd//2) * sign, sign folded into sinf in glue.
    q = q * cos + pltpu.roll(q, shift=hd // 2, axis=1) * sinf
    k = k * cos + pltpu.roll(k, shift=hd // 2, axis=1) * sinf

    q_ref[0, 0] = (q * scale).astype(q_ref.dtype)  # fold 1/sqrt(hd) into q
    k_ref[0, 0] = k.astype(k_ref.dtype)
    v_ref[0, 0] = v.astype(v_ref.dtype)


# ---------------------------------------------------------------------------
# Kernel B: flash attention (online softmax over kv tiles) + output projection.
# ---------------------------------------------------------------------------
def _flash_attn_kernel(q_ref, k_ref, v_ref, woT_ref, o_ref,
                       m_sc, l_sc, acc_sc, out_sc, *, tq, tkv):
    qi = pl.program_id(1)
    h = pl.program_id(2)
    ki = pl.program_id(3)
    nh = pl.num_programs(2)
    nk = pl.num_programs(3)

    q_start = qi * tq
    kv_start = ki * tkv

    @pl.when(jnp.logical_and(h == 0, ki == 0))
    def _zero_out_acc():
        # Per-(b, qi) accumulator for sum_h ctx_h @ Wo_h, kept in f32 VMEM.
        out_sc[...] = jnp.zeros_like(out_sc)

    @pl.when(ki == 0)
    def _init_state():
        m_sc[...] = jnp.full_like(m_sc, -jnp.inf)
        l_sc[...] = jnp.zeros_like(l_sc)
        acc_sc[...] = jnp.zeros_like(acc_sc)

    # Skip kv tiles that lie entirely above the causal diagonal (~2x less MXU
    # and exp work at long S).
    @pl.when(kv_start <= q_start + tq - 1)
    def _compute():
        q = q_ref[0, 0]                            # (tq, hd)  bf16, pre-scaled
        k = k_ref[0, 0]                            # (tkv, hd) bf16
        s = jax.lax.dot_general(q, k, (((1,), (1,)), ((), ())),
                                preferred_element_type=jnp.float32)  # (tq, tkv)

        row = jax.lax.broadcasted_iota(jnp.int32, (tq, tkv), 0) + q_start
        col = jax.lax.broadcasted_iota(jnp.int32, (tq, tkv), 1) + kv_start
        s = jnp.where(col <= row, s, -1e30)

        m_prev = m_sc[...]
        m_new = jnp.maximum(m_prev, jnp.max(s, axis=-1, keepdims=True))
        alpha = jnp.exp(m_prev - m_new)
        p = jnp.exp(s - m_new)

        l_sc[...] = alpha * l_sc[...] + jnp.sum(p, axis=-1, keepdims=True)
        acc_sc[...] = alpha * acc_sc[...] + jnp.dot(
            p.astype(v_ref.dtype), v_ref[0, 0],
            preferred_element_type=jnp.float32)
        m_sc[...] = m_new

    @pl.when(ki == nk - 1)
    def _finalize_head():
        # Normalize after P@V (O(tq*hd) instead of O(tq*tkv)); EUP reciprocal.
        ctx = acc_sc[...] * pl.reciprocal(l_sc[...], approx=True)   # (tq, hd)
        # Per-head slice of the output projection accumulated into the
        # resident f32 scratch; no (S, H) HBM round-trip in f32.
        out_sc[...] += jnp.dot(ctx.astype(woT_ref.dtype), woT_ref[0],
                               preferred_element_type=jnp.float32)

        @pl.when(h == nh - 1)
        def _write_output():
            # Single lane-dense store per (b, qi) block, directly in x.dtype.
            o_ref[0] = out_sc[...].astype(o_ref.dtype)


# ---------------------------------------------------------------------------
# Glue: weight packing, dtype casts, the two pallas_calls.
# ---------------------------------------------------------------------------
def llama_attention_pallas(x, Wq, Wk, Wv, Wo, cos, sin, n_heads,
                           *, q_tile=256, kv_tile=256):
    """x: (B, S, H).  Wq/Wk/Wv/Wo: (H, H) PyTorch-Linear (out, in) weights.
    cos/sin: (S, head_dim) rotary tables.  Returns (B, S, H) in x.dtype."""
    B, S, H = x.shape
    hd = H // n_heads
    tq = _pick_tile(S, q_tile)
    tkv = _pick_tile(S, kv_tile)
    scale = 1.0 / math.sqrt(hd)

    # ---- plain-JAX glue: bf16 casts, per-head weight packing, folded sin ----
    x_bf = x.astype(jnp.bfloat16)

    def per_head_cols(w):           # (H,H) torch (out,in) -> (nh, H, hd) of W.T
        return jnp.transpose(w.T.reshape(H, n_heads, hd), (1, 0, 2))

    wqkv_h = jnp.concatenate(
        [per_head_cols(Wq), per_head_cols(Wk), per_head_cols(Wv)],
        axis=-1).astype(jnp.bfloat16)                          # (nh, H, 3*hd)
    woT_h = Wo.T.reshape(n_heads, hd, H).astype(jnp.bfloat16)  # (nh, hd, H)

    sign = jnp.concatenate([-jnp.ones((hd // 2,), jnp.float32),
                            jnp.ones((hd // 2,), jnp.float32)])
    cos_f = cos.astype(jnp.float32)
    sin_f = sin.astype(jnp.float32) * sign[None, :]            # sign-folded

    vmem_limit = 32 * 1024 * 1024

    # ---- Kernel A: QKV projection + RoPE -> q/k/v (B, nh, S, hd) bf16 ------
    qkv_grid = pltpu.PrefetchScalarGridSpec(
        num_scalar_prefetch=0,
        grid=(n_heads, B, S // tq),      # head outermost: weights DMA'd once
        in_specs=[
            pl.BlockSpec((1, tq, H), lambda h, b, s: (b, s, 0)),       # x
            pl.BlockSpec((1, H, 3 * hd), lambda h, b, s: (h, 0, 0)),   # Wqkv
            pl.BlockSpec((tq, hd), lambda h, b, s: (s, 0)),            # cos
            pl.BlockSpec((tq, hd), lambda h, b, s: (s, 0)),            # sin
        ],
        out_specs=[
            pl.BlockSpec((1, 1, tq, hd), lambda h, b, s: (b, h, s, 0)),  # q
            pl.BlockSpec((1, 1, tq, hd), lambda h, b, s: (b, h, s, 0)),  # k
            pl.BlockSpec((1, 1, tq, hd), lambda h, b, s: (b, h, s, 0)),  # v
        ],
    )
    qkv_shape = jax.ShapeDtypeStruct((B, n_heads, S, hd), jnp.bfloat16)
    q_h, k_h, v_h = pl.pallas_call(
        functools.partial(_qkv_rope_kernel, head_dim=hd, scale=scale),
        out_shape=(qkv_shape, qkv_shape, qkv_shape),
        grid_spec=qkv_grid,
        compiler_params=pltpu.CompilerParams(
            dimension_semantics=("parallel", "parallel", "parallel"),
            vmem_limit_bytes=vmem_limit),
    )(x_bf, wqkv_h, cos_f, sin_f)

    # ---- Kernel B: flash attention + output projection ---------------------
    attn_grid = pltpu.PrefetchScalarGridSpec(
        num_scalar_prefetch=0,
        grid=(B, S // tq, n_heads, S // tkv),
        in_specs=[
            pl.BlockSpec((1, 1, tq, hd), lambda b, qi, h, ki: (b, h, qi, 0)),
            pl.BlockSpec((1, 1, tkv, hd), lambda b, qi, h, ki: (b, h, ki, 0)),
            pl.BlockSpec((1, 1, tkv, hd), lambda b, qi, h, ki: (b, h, ki, 0)),
            pl.BlockSpec((1, hd, H), lambda b, qi, h, ki: (h, 0, 0)),     # Wo
        ],
        out_specs=pl.BlockSpec((1, tq, H), lambda b, qi, h, ki: (b, qi, 0)),
        scratch_shapes=[
            pltpu.VMEM((tq, 1), jnp.float32),     # running max
            pltpu.VMEM((tq, 1), jnp.float32),     # running denominator
            pltpu.VMEM((tq, hd), jnp.float32),    # running context accumulator
            pltpu.VMEM((tq, H), jnp.float32),     # sum_h ctx_h @ Wo_h (f32)
        ],
    )
    out = pl.pallas_call(
        functools.partial(_flash_attn_kernel, tq=tq, tkv=tkv),
        out_shape=jax.ShapeDtypeStruct((B, S, H), x.dtype),
        grid_spec=attn_grid,
        compiler_params=pltpu.CompilerParams(
            dimension_semantics=("parallel", "parallel",
                                 "arbitrary", "arbitrary"),
            vmem_limit_bytes=vmem_limit),
    )(q_h, k_h, v_h, woT_h)

    return out


class AttnWrapper:
    """Mirrors the PyTorch AttnWrapper: call the wrapped attention, stash
    output[0] in .activations, return the full output tuple."""

    def __init__(self, attn):
        self.attn = attn
        self.activations = None

    def __call__(self, *args, **kwargs):
        output = self.attn(*args, **kwargs)
        self.activations = output[0]
        return output


def _ref_attention(x, Wq, Wk, Wv, Wo, cos, sin, n_heads):
    """Pure-JAX f32 reference (HF Llama attention semantics) for validation."""
    B, S, H = x.shape
    hd = H // n_heads

    def proj(w):
        return (x @ w.T).reshape(B, S, n_heads, hd).transpose(0, 2, 1, 3)

    q, k, v = proj(Wq), proj(Wk), proj(Wv)

    def rope(t):
        t1, t2 = t[..., :hd // 2], t[..., hd // 2:]
        rot = jnp.concatenate([-t2, t1], axis=-1)
        return t * cos[None, None] + rot * sin[None, None]

    q, k = rope(q), rope(k)
    scores = jnp.einsum("bhqd,bhkd->bhqk", q, k) / math.sqrt(hd)
    mask = jnp.tril(jnp.ones((S, S), dtype=bool))
    scores = jnp.where(mask, scores, -1e30)
    p = jax.nn.softmax(scores, axis=-1)
    ctx = jnp.einsum("bhqk,bhkd->bhqd", p, v)
    ctx = ctx.transpose(0, 2, 1, 3).reshape(B, S, H)
    return ctx @ Wo.T


if __name__ == "__main__":
    B, S, H, n_heads = 2, 8, 32, 4
    head_dim = H // n_heads

    key = jax.random.PRNGKey(0)
    kx, kq, kk, kv, ko = jax.random.split(key, 5)
    x = jax.random.normal(kx, (B, S, H), dtype=jnp.float32)
    Wq = 0.02 * jax.random.normal(kq, (H, H), dtype=jnp.float32)
    Wk = 0.02 * jax.random.normal(kk, (H, H), dtype=jnp.float32)
    Wv = 0.02 * jax.random.normal(kv, (H, H), dtype=jnp.float32)
    Wo = 0.02 * jax.random.normal(ko, (H, H), dtype=jnp.float32)

    # Rotary tables (standard Llama RoPE, base 10000).
    inv_freq = 1.0 / (10000.0 ** (jnp.arange(0, head_dim, 2,
                                             dtype=jnp.float32) / head_dim))
    t = jnp.arange(S, dtype=jnp.float32)
    freqs = jnp.outer(t, inv_freq)
    emb = jnp.concatenate([freqs, freqs], axis=-1)        # (S, head_dim)
    cos, sin = jnp.cos(emb), jnp.sin(emb)

    # The wrapped "attn" returns an HF-style tuple (attn_output, attn_weights,
    # past_key_value).
    # TODO(synk): attention-weights output and KV-cache handling are not
    # implemented (returned as None), matching the pass-through semantics only.
    def attn_fn(hidden_states):
        out = llama_attention_pallas(hidden_states, Wq, Wk, Wv, Wo,
                                     cos, sin, n_heads)
        return (out, None, None)

    wrapper = AttnWrapper(attn_fn)
    output = wrapper(x)
    attn_out = jax.block_until_ready(output[0])
    assert wrapper.activations is output[0]

    ref = jax.block_until_ready(_ref_attention(x, Wq, Wk, Wv, Wo,
                                               cos, sin, n_heads))
    np.testing.assert_allclose(np.asarray(attn_out), np.asarray(ref),
                               atol=2e-3, rtol=2e-2)
    print("KERNEL_OK")
</pallas_src>

<mosaic_0001>
module attributes {stable_mosaic.version = 11 : i64} {
  func.func @_qkv_rope_kernel(%arg0: i32, %arg1: i32, %arg2: i32, %arg3: memref<1x8x32xbf16, #tpu.memory_space<vmem>>, %arg4: memref<1x32x24xbf16, #tpu.memory_space<vmem>>, %arg5: memref<8x8xf32, #tpu.memory_space<vmem>>, %arg6: memref<8x8xf32, #tpu.memory_space<vmem>>, %arg7: memref<1x1x8x8xbf16, #tpu.memory_space<vmem>>, %arg8: memref<1x1x8x8xbf16, #tpu.memory_space<vmem>>, %arg9: memref<1x1x8x8xbf16, #tpu.memory_space<vmem>>) attributes {dimension_semantics = [#tpu.dimension_semantics<parallel>, #tpu.dimension_semantics<parallel>, #tpu.dimension_semantics<parallel>], iteration_bounds = array<i64: 4, 2, 1>, scalar_prefetch = 0 : i64, scratch_operands = 0 : i64, tpu.core_type = #tpu.core_type<tc>, window_params = [{transform_indices = @transform_0, window_bounds = array<i64: 1, 8, 32>}, {transform_indices = @transform_1, window_bounds = array<i64: 1, 32, 24>}, {transform_indices = @transform_2, window_bounds = array<i64: 8, 8>}, {transform_indices = @transform_3, window_bounds = array<i64: 8, 8>}, {transform_indices = @transform_4, window_bounds = array<i64: 1, 1, 8, 8>}, {transform_indices = @transform_5, window_bounds = array<i64: 1, 1, 8, 8>}, {transform_indices = @transform_6, window_bounds = array<i64: 1, 1, 8, 8>}]} {
    %c0 = arith.constant 0 : index
    %c0_0 = arith.constant 0 : index
    %c0_1 = arith.constant 0 : index
    %0 = vector.load %arg3[%c0, %c0_0, %c0_1] : memref<1x8x32xbf16, #tpu.memory_space<vmem>>, vector<1x8x32xbf16>
    %1 = vector.shape_cast %0 : vector<1x8x32xbf16> to vector<8x32xbf16>
    %c0_2 = arith.constant 0 : index
    %c0_3 = arith.constant 0 : index
    %c0_4 = arith.constant 0 : index
    %2 = vector.load %arg4[%c0_2, %c0_3, %c0_4] : memref<1x32x24xbf16, #tpu.memory_space<vmem>>, vector<1x32x24xbf16>
    %3 = vector.shape_cast %2 : vector<1x32x24xbf16> to vector<32x24xbf16>
    %cst = arith.constant dense<0.000000e+00> : vector<8x24xf32>
    %4 = tpu.matmul %1, %3, %cst {dimension_numbers = #tpu.dot_dimension_numbers<[1], [0], [0], [1], [0, 0, 1, 1], [], []>} : vector<8x32xbf16>, vector<32x24xbf16>, vector<8x24xf32> -> vector<8x24xf32>
    %5 = vector.extract_strided_slice %4 {offsets = [0, 0], sizes = [8, 8], strides = [1, 1]} : vector<8x24xf32> to vector<8x8xf32>
    %6 = vector.extract_strided_slice %4 {offsets = [0, 8], sizes = [8, 8], strides = [1, 1]} : vector<8x24xf32> to vector<8x8xf32>
    %7 = vector.extract_strided_slice %4 {offsets = [0, 16], sizes = [8, 8], strides = [1, 1]} : vector<8x24xf32> to vector<8x8xf32>
    %c0_5 = arith.constant 0 : index
    %c0_6 = arith.constant 0 : index
    %8 = vector.load %arg5[%c0_5, %c0_6] : memref<8x8xf32, #tpu.memory_space<vmem>>, vector<8x8xf32>
    %c0_7 = arith.constant 0 : index
    %c0_8 = arith.constant 0 : index
    %9 = vector.load %arg6[%c0_7, %c0_8] : memref<8x8xf32, #tpu.memory_space<vmem>>, vector<8x8xf32>
    %10 = arith.mulf %5, %8 : vector<8x8xf32>
    %c4_i32 = arith.constant 4 : i32
    %11 = tpu.dynamic_rotate %5 by %c4_i32 dim 1 : vector<8x8xf32>, i32 -> vector<8x8xf32>
    %12 = arith.mulf %11, %9 : vector<8x8xf32>
    %13 = arith.addf %10, %12 : vector<8x8xf32>
    %14 = arith.mulf %6, %8 : vector<8x8xf32>
    %c4_i32_9 = arith.constant 4 : i32
    %15 = tpu.dynamic_rotate %6 by %c4_i32_9 dim 1 : vector<8x8xf32>, i32 -> vector<8x8xf32>
    %16 = arith.mulf %15, %9 : vector<8x8xf32>
    %17 = arith.addf %14, %16 : vector<8x8xf32>
    %cst_10 = arith.constant 0.353553385 : f32
    %18 = vector.broadcast %cst_10 : f32 to vector<8x8xf32>
    %19 = arith.mulf %13, %18 : vector<8x8xf32>
    %20 = arith.truncf %19 : vector<8x8xf32> to vector<8x8xbf16>
    %c0_11 = arith.constant 0 : index
    %c0_12 = arith.constant 0 : index
    %c0_13 = arith.constant 0 : index
    %c0_14 = arith.constant 0 : index
    %21 = vector.load %arg7[%c0_11, %c0_12, %c0_13, %c0_14] : memref<1x1x8x8xbf16, #tpu.memory_space<vmem>>, vector<1x1x8x8xbf16>
    %22 = vector.shape_cast %21 : vector<1x1x8x8xbf16> to vector<8x8xbf16>
    %23 = vector.shape_cast %20 : vector<8x8xbf16> to vector<1x1x8x8xbf16>
    tpu.vector_store %arg7[%c0_11, %c0_12, %c0_13, %c0_14], %23 {strides = array<i32>} : memref<1x1x8x8xbf16, #tpu.memory_space<vmem>>, vector<1x1x8x8xbf16>,
    %24 = arith.truncf %17 : vector<8x8xf32> to vector<8x8xbf16>
    %c0_15 = arith.constant 0 : index
    %c0_16 = arith.constant 0 : index
    %c0_17 = arith.constant 0 : index
    %c0_18 = arith.constant 0 : index
    %25 = vector.load %arg8[%c0_15, %c0_16, %c0_17, %c0_18] : memref<1x1x8x8xbf16, #tpu.memory_space<vmem>>, vector<1x1x8x8xbf16>
    %26 = vector.shape_cast %25 : vector<1x1x8x8xbf16> to vector<8x8xbf16>
    %27 = vector.shape_cast %24 : vector<8x8xbf16> to vector<1x1x8x8xbf16>
    tpu.vector_store %arg8[%c0_15, %c0_16, %c0_17, %c0_18], %27 {strides = array<i32>} : memref<1x1x8x8xbf16, #tpu.memory_space<vmem>>, vector<1x1x8x8xbf16>,
    %28 = arith.truncf %7 : vector<8x8xf32> to vector<8x8xbf16>
    %c0_19 = arith.constant 0 : index
    %c0_20 = arith.constant 0 : index
    %c0_21 = arith.constant 0 : index
    %c0_22 = arith.constant 0 : index
    %29 = vector.load %arg9[%c0_19, %c0_20, %c0_21, %c0_22] : memref<1x1x8x8xbf16, #tpu.memory_space<vmem>>, vector<1x1x8x8xbf16>
    %30 = vector.shape_cast %29 : vector<1x1x8x8xbf16> to vector<8x8xbf16>
    %31 = vector.shape_cast %28 : vector<8x8xbf16> to vector<1x1x8x8xbf16>
    tpu.vector_store %arg9[%c0_19, %c0_20, %c0_21, %c0_22], %31 {strides = array<i32>} : memref<1x1x8x8xbf16, #tpu.memory_space<vmem>>, vector<1x1x8x8xbf16>,
    return
  }
  func.func @transform_0(%arg0: i32, %arg1: i32, %arg2: i32) -> (i32, i32, i32) {
    %c0_i32 = arith.constant 0 : i32
    %c0_i32_0 = arith.constant 0 : i32
    return %arg1, %arg2, %c0_i32 : i32, i32, i32
  }
  func.func @transform_1(%arg0: i32, %arg1: i32, %arg2: i32) -> (i32, i32, i32) {
    %c0_i32 = arith.constant 0 : i32
    %c0_i32_0 = arith.constant 0 : i32
    %c0_i32_1 = arith.constant 0 : i32
    return %arg0, %c0_i32, %c0_i32_0 : i32, i32, i32
  }
  func.func @transform_2(%arg0: i32, %arg1: i32, %arg2: i32) -> (i32, i32) {
    %c0_i32 = arith.constant 0 : i32
    %c0_i32_0 = arith.constant 0 : i32
    return %arg2, %c0_i32 : i32, i32
  }
  func.func @transform_3(%arg0: i32, %arg1: i32, %arg2: i32) -> (i32, i32) {
    %c0_i32 = arith.constant 0 : i32
    %c0_i32_0 = arith.constant 0 : i32
    return %arg2, %c0_i32 : i32, i32
  }
  func.func @transform_4(%arg0: i32, %arg1: i32, %arg2: i32) -> (i32, i32, i32, i32) {
    %c0_i32 = arith.constant 0 : i32
    %c0_i32_0 = arith.constant 0 : i32
    return %arg1, %arg0, %arg2, %c0_i32 : i32, i32, i32, i32
  }
  func.func @transform_5(%arg0: i32, %arg1: i32, %arg2: i32) -> (i32, i32, i32, i32) {
    %c0_i32 = arith.constant 0 : i32
    %c0_i32_0 = arith.constant 0 : i32
    return %arg1, %arg0, %arg2, %c0_i32 : i32, i32, i32, i32
  }
  func.func @transform_6(%arg0: i32, %arg1: i32, %arg2: i32) -> (i32, i32, i32, i32) {
    %c0_i32 = arith.constant 0 : i32
    %c0_i32_0 = arith.constant 0 : i32
    return %arg1, %arg0, %arg2, %c0_i32 : i32, i32, i32, i32
  }
}

</mosaic_0001>

<bundles_post_ra>
// kernel: tpu_custom_call.1
= control target key start
LH: loop header
LB: loop body
LE: loop exit
PB: predicated region body
PF: predicated region fallthrough
CT: control target
= control target key end

     0   :  { %s1301_s0 = inlined_call_operand.vmem [shape: bf16[2,8,32], index: 0, kind: input, shape index: {}]   ;;  %s1302_s1 = inlined_call_operand.vmem [shape: bf16[4,32,24], index: 1, kind: input, shape index: {}]   ;;  %s1303_s2 = inlined_call_operand.vmem [shape: f32[8,8], index: 2, kind: input, shape index: {}]   ;;  %s1304_s3 = inlined_call_operand.vmem [shape: f32[8,8], index: 3, kind: input, shape index: {}]   ;;  %s1305_s4 = inlined_call_operand.hbm [shape: bf16[2,4,8,8], index: 4, kind: output, shape index: {0}]   ;;  %s1306_s5 = inlined_call_operand.hbm [shape: bf16[2,4,8,8], index: 5, kind: output, shape index: {1}]   ;;  %s1307_s6 = inlined_call_operand.hbm [shape: bf16[2,4,8,8], index: 6, kind: output, shape index: {2}]  }
   0x1   :  { %1311 = sst [smem:[#allocation9_spill]] %s1301_s0 }
   0x2   :  { %12 = vsyncpa [#allocation3], 0 }
   0x3   :  { %14 = vsyncpa [#allocation3 + $0x1], 0 }
   0x4   :  { %15 = vsyncpa [#allocation5], 0 }
   0x5   :  { %17 = vsyncpa [#allocation5 + $0x1], 0  ;;  %s1065_s21 = smov 0   ;;  %s1067_s22 = smov 0  }
   0x6   :  { %s1069_s23 = smov 0   ;;  %s1071_s24 = smov 0  }
   0x7   :  { %s1073_s25 = smov 0   ;;  %s1075_s26 = smov 0  }
   0x8   :  { %s1077_s27 = smov 0   ;;  %s1079_s28 = smov 0  }
   0x9 LB: > { %s1309_s29 = sadd.s32 4294967295, %s1018_s28   ;;  %s1308_s30 = sadd.s32 4294967294, %s1018_s28   ;;  %s1018_s28 = sphi %s1079_s28, %s23_s28   ;;  %s1014_s27 = sphi %s1077_s27, %s1324_s27   ;;  %s1010_s26 = sphi %s1075_s26, %s1323_s26   ;;  %s1006_s25 = sphi %s1073_s25, %s1322_s25   ;;  %s1002_s24 = sphi %s1071_s24, %s1321_s24   ;;  %s998_s23 = sphi %s1069_s23, %s1320_s23   ;;  %s994_s22 = sphi %s1067_s22, %s1319_s22   ;;  %s990_s21 = sphi %s1065_s21, %s1318_s21  }
   0xa   : > { %s38_s7 = sadd.s32 1, %s1010_s26  ;;  %s42_s8 = sadd.s32 1, %s1014_s27 }
   0xb   : > { %p40_p0 = scmp.ge.s32.totalorder %s38_s7, 2  ;;  %p169_p1 = scmp.ne.s32.totalorder %s998_s23, %s994_s22 }
   0xc   : > { %p170_p2 = scmp.eq.s32.totalorder %s1309_s29, 7  ;;  %p175_p5 = scmp.ne.s32.totalorder %s994_s22, %s990_s21 }
   0xd   : > { %s1326_s7 = smov (%p40_p0, %s38_s7), 0  ;;  %s1328_s8 = smov (!%p40_p0, %s42_s8), %s1014_s27 }
   0xe   : > { %s152_s9 = ssub.s32 %s1010_s26, %s1326_s7  ;;  %p1118_p3 = por %p170_p2, %p169_p1 }
   0xf   : > { %p44_p4 = scmp.ge.s32.totalorder %s1328_s8, 4  ;;  %p176_p6 = scmp.eq.s32.totalorder %s1308_s30, 7 }
  0x10   : > { %p737_p7 = scmp.ge.s32.totalorder %s1018_s28, 1  ;;  %p286_p9 = scmp.lt.s32.totalorder %s1018_s28, 9 }
  0x11   : > { %s1330_s8 = smov (%p44_p4, %s1328_s8), 0  ;;  %p1129_p8 = por %p176_p6, %p175_p5 }
  0x12   : > { %s153_s12 = ssub.s32 %s1014_s27, %s1330_s8  ;;  %s159_s13 = sadd.s32 1, %s998_s23 }
  0x13   : > { %s154_s14 = sor.u32 %s153_s12, %s152_s9  ;;  %p287_p10 = pnand %p737_p7, %p286_p9 }
  0x14   : > { %p157_p11 = scmp.eq.s32.totalorder %s154_s14, 0  ;;  %p348_p12 = scmp.lt.s32.totalorder (!%p287_p10), %s1006_s25, 3  ;;  %v1020_v0 = vmov (!%p287_p10), 0.0   ;;  %vm1021_vm0 = vmmov (!%p287_p10), 0   ;;  %vm379_vm1 = vcmask (!%p287_p10), 261120   ;;  %v424_v9 = vld [vmem:[%s1304_s3] sm:$0xff] (!%p287_p10) }
  0x15   : > { %290 = sbr.rel (%p287_p10) target bundleno = 871 (0x367), region = 36  ;;  %p341_p13 = scmp.lt.s32.totalorder (!%p287_p10), %s1002_s24, 1  ;;  %766 = vmatprep.subr.bf16.mxu0 (!%p287_p10), %v1020_v0  ;;  %770 = vmatprep.mubr.msk.bf16.mxu0 (!%p287_p10), %vm1021_vm0, %v1020_v0  ;;  %v423_v10 = vld [vmem:[%s1303_s2] sm:$0xff] (!%p287_p10)  ;;  %vm426_vm2 = vcmask (!%p287_p10), 1047616   ;;  %vm466_vm3 = vcmask (!%p287_p10), 60416  }
  0x16   : > { %s1138_s15 = scalar_select %p157_p11, %s998_s23, %s159_s13  }
  0x17   : > { %s1314_s0 = sld [smem:[#allocation9_spill]] (!%p287_p10)  ;;  %s1022_s29 = smov (!%p287_p10), 8  }
  0x18   : > { %s1024_s19 = smov (!%p287_p10), 4   ;;  %s324_s13 = sand.u32 (!%p287_p10), 1, %s994_s22  }
  0x19   : > { %s1159_s14 = sshll.u32 (!%p287_p10), %s324_s13, 2 }
  0x1c   : > { %s349_s16 = scalar_select %p348_p12, %s1006_s25, 3 }
  0x1d   : > { %s342_s17 = scalar_select %p341_p13, %s1002_s24, 1 }
  0x1e   : > { %s760_s18 = sshll.u32 %s349_s16, 4  ;;  %s1023_s16 = smov 120  }
  0x1f   : > { %s352_s9 = scalar_lea.vmem %s1302_s1, %s760_s18  ;;  %s741_s12 = sshll.u32 %s342_s17, 2 }
  0x20   : > { %v862_v1 = vld [vmem:[%s352_s9] sm:$0xff]   ;;  %v863_v2 = vld [vmem:[%s352_s9 + $0x8] sm:$0xff]   ;;  %s347_s30 = scalar_lea.vmem %s1314_s0, %s741_s12  ;;  %s1025_s9 = smov 124  }
  0x21   : > { %767 = vmatpush3.bf16.msra.mxu0 %v862_v1  ;;  %v362_v3 = vld [vmem:[%s347_s30] sm:$0xf]  ;;  %s1026_s12 = smov 112   ;;  %s1310_s30 = scalar_lea.vmem [#allocation6], %s1159_s14 }
  0x22   : > { %768 = vmatprep.subr.bf16.mxu0 %v1020_v0 }
  0x25   : > { %769 = vmatpush3.bf16.msra.mxu0 %v863_v2 }
  0x28   : > { %771 = vmatmul.mubr.msk.bf16.vlgmr.msra.gmra.mrb[0].mxu0 %vm379_vm1, %v362_v3 }
  0xfb   : > { %v417_v4 = vpop.f32.mrb[0].mxu0 }
  0xfc   : > { %427 = vrot.lane.b32.xlu1 %v417_v4, %s1022_s29  ;;  %449 = vrot.lane.b32.xlu0 %v417_v4, %s1023_s16  ;;  %v772_v5 = vpop.f32.mrb[1].mxu0  ;;  %v762_v22 = vpack.c.bf16 %v417_v4, %v417_v4  ;;  %v425_v28 = vmul.f32 %v423_v10, %v417_v4 }
  0xfd   : > { %v420_v6 = vpop.f32.mrb[2].mxu0 }
  0xfe   : > { %v773_v7 = vpop.f32.mrb[3].mxu0 }
 0x16e   : > { %v450_v8 = vpop.permute.xlu0 %449  ;;  %v428_v13 = vpop.permute.xlu1 %427 }
 0x16f   : > { %452 = vrot.lane.b32.xlu0 %v450_v8, %s1022_s29  ;;  %v429_v14 = vsel %vm426_vm2, %v428_v13, %v417_v4 }
 0x173   : > { %434 = vrot.lane.b32.xlu0 %v424_v9, %s1024_s19 }
 0x177   : > { %444 = vrot.lane.b32.xlu0 %v423_v10, %s1022_s29 }
 0x1e1   : > { %v453_v11 = vpop.permute.xlu0 %452 }
 0x1e2   : > { %v454_v12 = vsel %vm426_vm2, %v453_v11, %v450_v8 }
 0x1e3   : > { %455 = vrot.lane.b32.xlu1 %v454_v12, %s1022_s29 }
 0x1e5   : > { %v435_v16 = vpop.permute.xlu0 %434 }
 0x1e7   : > { %430 = vrot.lane.b32.xlu1 %v429_v14, %s1022_s29  ;;  %s752_s29 = sshll.u32 %s1002_s24, 2 }
 0x1e8   : > { %s507_s17 = sadd.s32 %s1006_s25, %s752_s29  ;;  %s1027_s29 = smov [#allocation2]  }
 0x1e9   : > { %v445_v23 = vpop.permute.xlu0 %444  ;;  %s1163_s18 = sshll.u32 %s507_s17, 6  ;;  %s868_s17 = sshll.u32 %s1027_s29, 4  ;;  %s869_s17 = int_to_ptr.vmem [resolvable:$false] %s868_s17 }
 0x1ea   : > { %v447_v24 = vmul.f32 %v445_v23, %v417_v4 }
 0x255   : > { %v456_v15 = vpop.permute.xlu1 %455 }
 0x256   : > { %v457_v17 = vsel %vm426_vm2, %v456_v15, %v450_v8 }
 0x257   : > { %v458_v18 = vmul.f32 %v457_v17, %v435_v16 }
 0x259   : > { %v431_v19 = vpop.permute.xlu1 %430  ;;  %460 = vrot.lane.b32.xlu1 %v458_v18, %s1024_s19  ;;  %s326_s19 = scalar_lea.vmem [#allocation2], %s1159_s14 }
 0x25a   : > { %v432_v20 = vsel %vm426_vm2, %v431_v19, %v417_v4  ;;  %s511_s24 = sshll.u32 %s326_s19, 4  ;;  %s1176_s24 = int_to_ptr.vmem [resolvable:$true] %s511_s24 }
 0x25b   : > { %v437_v21 = vmul.f32 %v435_v16, %v432_v20  ;;  %p871_p4 = scmp.lt.s32.totalorder %s1176_s24, %s869_s17 }
 0x25d   : > { %439 = vrot.lane.b32.xlu0 %v437_v21, %s1025_s9  ;;  %s1174_s9 = scalar_lea.hbm %s1305_s4, %s1163_s18 }
 0x261   : > { %480 = vrot.lane.b32.xlu0 %v762_v22, %s1026_s12  ;;  %s864_s12 = scalar_lea.vmem %s1176_s24, 64 }
 0x262   : > { %p865_p0 = scmp.ne.s32.totalorder %s1176_s24, %s864_s12 }
 0x264   : > { %p866_p1 = pnand %p865_p0, %p1118_p3 }
 0x266   : > { %p867_p2 = pneg %p866_p1 }
 0x2cb   : > { %v461_v25 = vpop.permute.xlu1 %460 }
 0x2cc   : > { %v463_v26 = vadd.f32 %v461_v25, %v447_v24 }
 0x2ce   : > { %v761_v27 = vpack.c.bf16 %v463_v26, %v463_v26 }
 0x2cf   : > { %v440_v29 = vpop.permute.xlu0 %439 }
 0x2d0   : > { %v442_v30 = vadd.f32 %v440_v29, %v425_v28  ;;  %472 = vrot.lane.b32.xlu1 %v761_v27, %s1023_s16  ;;  %s485_s16 = scalar_lea.sflag [#allocation3], %s324_s13 }
 0x2d2   : > { %v464_v31 = vmul.f32 0.35355338, %v442_v30 }
 0x2d3   : > { %v481_v32 = vpop.permute.xlu0 %480 }
 0x2d4   : > { %v465_v33 = vpack.c.bf16 %v464_v31, %v464_v31  ;;  %483 = vst.msk [vmem:[%s1310_s30] sm:$0xf] %vm466_vm3, %v481_v32  ;;  %s870_s30 = scalar_lea.vmem %s869_s17, 128 }
 0x2d5   : > { %p872_p5 = scmp.lt.s32.totalorder %s870_s30, %s864_s12 }
 0x2d6   : > { %467 = vst.msk [vmem:[%s326_s19] sm:$0xf] %vm466_vm3, %v465_v33 }
 0x2d7   : > { %p873_p6 = por %p872_p5, %p871_p4 }
 0x2d9   : > { %p874_p7 = pnand %p873_p6, %p867_p2 }
 0x2db   : > { %877 = shalt.err (!%p874_p7)
}
 0x2dc   : > { %s878_s13 = scalar_lea.hbm %s1174_s9, 64  ;;  %s882_s25 = scalar_lea.hbm %s1305_s4, 512 }
 0x2dd   : > { %p879_p9 = scmp.ne.s32.totalorder %s1174_s9, %s878_s13  ;;  %p883_p12 = scmp.lt.u32.totalorder %s1174_s9, %s1305_s4 }
 0x2de   : > { %p884_p13 = scmp.lt.u32.totalorder %s882_s25, %s878_s13  ;;  %p886_p1 = scmp.lt.u32.totalorder %s878_s13, %s1174_s9 }
 0x2df   : > { %p880_p10 = pnand %p879_p9, %p1118_p3 }
 0x2e0   : > { %p885_p0 = por %p884_p13, %p883_p12 }
 0x2e1   : > { %p881_p11 = pneg %p880_p10 }
 0x2e2   : > { %p887_p2 = por %p886_p1, %p885_p0 }
 0x2e4   : > { %p888_p4 = pnand %p887_p2, %p881_p11 }
 0x2e6   : > { %891 = shalt.err (!%p888_p4)
}
 0x2e7   : > { %774 = dma.vmem_to_hbm [thread:$0]  (%p1118_p3), %s1176_s24, 64, %s1174_s9, %s485_s16  }
 0x2e8   : > { %s1315_s30 = sadd.s32 4294967295, %s1018_s28   ;;  %s333_s19 = scalar_lea.vmem [#allocation4], %s1159_s14 }
 0x2e9   : > { %s1202_s12 = sand.u32 1, %s1315_s30   ;;  %s527_s13 = sshll.u32 %s333_s19, 4  ;;  %s1213_s13 = int_to_ptr.vmem [resolvable:$true] %s527_s13 }
 0x2ea   : > { %s1316_s20 = scalar_lea.vmem [#allocation6], %s1159_s14  ;;  %s1211_s0 = scalar_lea.hbm %s1306_s5, %s1163_s18 }
 0x2eb   : > { %s543_s25 = sshll.u32 %s1316_s20, 4  ;;  %s1221_s16 = scalar_lea.hbm %s1307_s6, %s1163_s18  ;;  %s1215_s25 = int_to_ptr.vmem [resolvable:$true] %s543_s25 }
 0x2ec   : > { %s490_s14 = scalar_lea.sflag [#allocation5], %s1202_s12  ;;  %s892_s30 = scalar_lea.vmem %s1213_s13, 64 }
 0x2ed   : > { %p893_p5 = scmp.ne.s32.totalorder %s1213_s13, %s892_s30  ;;  %s1028_s20 = smov [#allocation4]  }
 0x2ee   : > { %s896_s29 = sshll.u32 %s1028_s20, 4  ;;  %s897_s29 = int_to_ptr.vmem [resolvable:$false] %s896_s29 }
 0x2ef   : > { %p894_p6 = pnand %p893_p5, %p1118_p3  ;;  %s898_s17 = scalar_lea.vmem %s897_s29, 128 }
 0x2f0   : > { %p899_p9 = scmp.lt.s32.totalorder %s1213_s13, %s897_s29  ;;  %p900_p10 = scmp.lt.s32.totalorder %s898_s17, %s892_s30 }
 0x2f1   : > { %p895_p7 = pneg %p894_p6 }
 0x2f2   : > { %p901_p11 = por %p900_p10, %p899_p9 }
 0x2f4   : > { %p902_p12 = pnand %p901_p11, %p895_p7 }
 0x342   : > { %v473_v34 = vpop.permute.xlu1 %472 }
 0x343   : > { %475 = vst.msk [vmem:[%s333_s19] sm:$0xf] %vm466_vm3, %v473_v34 }
 0x344   : > { %905 = shalt.err (!%p902_p12)
}
 0x345   : > { %s906_s18 = scalar_lea.hbm %s1211_s0, 64  ;;  %s910_s9 = scalar_lea.hbm %s1306_s5, 512 }
 0x346   : > { %p907_p13 = scmp.ne.s32.totalorder %s1211_s0, %s906_s18  ;;  %p911_p2 = scmp.lt.u32.totalorder %s1211_s0, %s1306_s5 }
 0x347   : > { %p912_p4 = scmp.lt.u32.totalorder %s910_s9, %s906_s18  ;;  %p914_p6 = scmp.lt.u32.totalorder %s906_s18, %s1211_s0 }
 0x348   : > { %p908_p0 = pnand %p907_p13, %p1118_p3 }
 0x349   : > { %p913_p5 = por %p912_p4, %p911_p2 }
 0x34a   : > { %p909_p1 = pneg %p908_p0 }
 0x34b   : > { %p915_p7 = por %p914_p6, %p913_p5 }
 0x34d   : > { %p916_p9 = pnand %p915_p7, %p909_p1 }
 0x34f   : > { %919 = shalt.err (!%p916_p9)
}
 0x350   : > { %775 = dma.vmem_to_hbm [thread:$0]  (%p1118_p3), %s1213_s13, 64, %s1211_s0, %s490_s14  }
 0x351   : > { %s920_s30 = scalar_lea.vmem %s1215_s25, 64  ;;  %s1029_s17 = smov [#allocation6]  }
 0x352   : > { %p921_p10 = scmp.ne.s32.totalorder %s1215_s25, %s920_s30  ;;  %s924_s18 = sshll.u32 %s1029_s17, 4  ;;  %s925_s18 = int_to_ptr.vmem [resolvable:$false] %s924_s18 }
 0x353   : > { %s926_s19 = scalar_lea.vmem %s925_s18, 128  ;;  %p927_p13 = scmp.lt.s32.totalorder %s1215_s25, %s925_s18 }
 0x354   : > { %p922_p11 = pnand %p921_p10, %p1118_p3  ;;  %p928_p0 = scmp.lt.s32.totalorder %s926_s19, %s920_s30 }
 0x356   : > { %p923_p12 = pneg %p922_p11  ;;  %p929_p1 = por %p928_p0, %p927_p13 }
 0x358   : > { %p930_p2 = pnand %p929_p1, %p923_p12 }
 0x35a   : > { %933 = shalt.err (!%p930_p2)
}
 0x35b   : > { %s934_s0 = scalar_lea.hbm %s1221_s16, 64  ;;  %s938_s9 = scalar_lea.hbm %s1307_s6, 512 }
 0x35c   : > { %p935_p4 = scmp.ne.s32.totalorder %s1221_s16, %s934_s0  ;;  %p939_p7 = scmp.lt.u32.totalorder %s1221_s16, %s1307_s6 }
 0x35d   : > { %p940_p9 = scmp.lt.u32.totalorder %s938_s9, %s934_s0  ;;  %p942_p11 = scmp.lt.u32.totalorder %s934_s0, %s1221_s16 }
 0x35e   : > { %p936_p5 = pnand %p935_p4, %p1118_p3 }
 0x35f   : > { %p941_p10 = por %p940_p9, %p939_p7 }
 0x360   : > { %p937_p6 = pneg %p936_p5 }
 0x361   : > { %p943_p12 = por %p942_p11, %p941_p10 }
 0x363   : > { %p944_p13 = pnand %p943_p12, %p937_p6 }
 0x365   : > { %947 = shalt.err (!%p944_p13)
}
 0x366   : > { %776 = dma.vmem_to_hbm [thread:$0]  (%p1118_p3), %s1215_s25, 64, %s1221_s16, %s490_s14  }
 0x367 PF: > { %p790_p0 = scmp.ge.s32.totalorder %s1018_s28, 2  ;;  %s555_s30 = sand.u32 1, %s990_s21  }
 0x368   : > { %s556_s17 = scalar_lea.sflag [#allocation3], %s555_s30 }
 0x369   : > { %p781_p1 = pnand %p790_p0, %p1129_p8 }
 0x36b   : > { %981 = dma.done.wait (!%p781_p1), %s556_s17, 64  }
 0x36c   : > { %983 = vsyncadd (!%p781_p1), %s556_s17, 4294967232  ;;  %s1317_s18 = sadd.s32 4294967294, %s1018_s28  }
 0x36d   : > { %s564_s19 = sand.u32 1, %s1317_s18  }
 0x36e   : > { %s565_s10 = scalar_lea.sflag [#allocation5], %s564_s19 }
 0x36f   : > { %985 = dma.done.wait (!%p781_p1), %s565_s10, 128  }
 0x370   : > { %987 = vsyncadd (!%p781_p1), %s565_s10, 4294967168  ;;  %s23_s28 = sadd.s32 1, %s1018_s28   ;;  %s1318_s21 = smov %s994_s22 }
 0x371   : > { %p20_p3 = scmp.ge.s32.totalorder %s23_s28, 10   ;;  %s1319_s22 = smov %s998_s23 }
 0x372   : > { %s1320_s23 = smov %s1138_s15  ;;  %s1321_s24 = smov %s1010_s26 }
 0x373   : > { %s1322_s25 = smov %s1014_s27  ;;  %s1323_s26 = smov %s1326_s7 }
 0x374   : > { %s1324_s27 = smov %s1330_s8  ;;  %22 = sbr.rel (!%p20_p3) target bundleno = 9 (0x9), region = 112 }
 0x37b   :  { %579 = vsyncpa [#allocation3], 1 }
 0x37c   :  { %581 = vsyncpa [#allocation3 + $0x1], 1 }
 0x37d   :  { %582 = vsyncpa [#allocation5], 1 }
 0x37e   :  { %584 = vsyncpa [#allocation5 + $0x1], 1 }

</bundles_post_ra>
